<compile_context>
chip_gen: v6e
topology: v6e:2x2x1
jax: 0.10.0
libtpu: 0.0.40
codegen_flags: <defaults>
</compile_context>

<pallas_src>
import jax
import jax.numpy as jnp
from jax.experimental import pallas as pl
from jax.experimental.pallas import tpu as pltpu


# ------------------------------------------------------------------
# Fused kernel: time MLP (column-major, this batch only) + FiLM modulation
# ------------------------------------------------------------------
def _film_time_kernel(tT_ref, w1T_ref, b1_ref, w2T_ref, b2_ref, x_ref, o_ref):
    # tT_ref : (T, B)    time vectors, one column per batch element
    # w1T_ref: (L, T)    first Linear (transposed)      b1_ref: (L, 1)
    # w2T_ref: (2C, L)   second Linear (transposed)     b2_ref: (2C, 1)
    # x_ref  : (1, C, St) lane-dense image tile for this (batch, spatial) step
    # o_ref  : (1, C, St)
    bi = pl.program_id(0)
    B = tT_ref.shape[1]
    C = x_ref.shape[1]

    # Select this program's batch column of t via a one-hot matmul (static
    # shapes, exact, no dynamic lane slicing), then run the tiny MLP on that
    # single column.  Recomputed per program -> no cross-program state.
    onehot = (jax.lax.broadcasted_iota(jnp.int32, (B, 1), 0) == bi)
    t_col = jnp.dot(tT_ref[...].astype(jnp.float32), onehot.astype(jnp.float32),
                    preferred_element_type=jnp.float32)                  # (T, 1)

    h = jnp.dot(w1T_ref[...].astype(jnp.float32), t_col,
                preferred_element_type=jnp.float32)
    h = jnp.maximum(h + b1_ref[...], 0.0)                                # (L, 1)
    mb = jnp.dot(w2T_ref[...].astype(jnp.float32), h,
                 preferred_element_type=jnp.float32) + b2_ref[...]       # (2C, 1)

    m = mb[:C, :]          # (C, 1)  scale   (torch .chunk(2, dim=1))
    b = mb[C:, :]          # (C, 1)  shift
    # (C, 1) broadcasts against (1, C, St): lane splat + one fused mul-add / vreg.
    o_ref[...] = (m * x_ref[...] + b).astype(o_ref.dtype)


def _pick_spatial_tile(S, max_tile=8192):
    """Largest multiple-of-128 divisor of S that is <= max_tile (else full S)."""
    if S % 128 != 0 or S <= max_tile:
        return S
    best = 128
    t = 128
    while t <= max_tile:
        if S % t == 0:
            best = t
        t += 128
    return best


# ------------------------------------------------------------------
# Wrapper
# ------------------------------------------------------------------
def add_time_to_image(x, t, w1, b1, w2, b2, *, max_spatial_tile=8192):
    """x: (B, C, D, H, W), t: (B, time_dim).  Weights stored as (in, out)."""
    B, C, D, H, W = x.shape
    T = t.shape[1]
    L = w1.shape[1]
    S = D * H * W
    tile_s = _pick_spatial_tile(S, max_spatial_tile)
    n_s = S // tile_s

    # Layout plumbing (free wrapper-side relayouts): lane-dense image slab and
    # column-major MLP parameters.
    x3 = x.reshape(B, C, S)
    tT = t.T                       # (T, B)
    w1T = w1.T                     # (L, T)
    w2T = w2.T                     # (2C, L)
    b1c = b1.reshape(L, 1)         # (L, 1)
    b2c = b2.reshape(2 * C, 1)     # (2C, 1)

    out = pl.pallas_call(
        _film_time_kernel,
        out_shape=jax.ShapeDtypeStruct((B, C, S), x.dtype),
        grid_spec=pltpu.PrefetchScalarGridSpec(
            num_scalar_prefetch=0,
            grid=(B, n_s),
            in_specs=[
                pl.BlockSpec((T, B), lambda b, s: (0, 0)),             # tT
                pl.BlockSpec((L, T), lambda b, s: (0, 0)),             # w1T
                pl.BlockSpec((L, 1), lambda b, s: (0, 0)),             # b1 column
                pl.BlockSpec((2 * C, L), lambda b, s: (0, 0)),         # w2T
                pl.BlockSpec((2 * C, 1), lambda b, s: (0, 0)),         # b2 column
                pl.BlockSpec((1, C, tile_s), lambda b, s: (b, 0, s)),  # x tile
            ],
            out_specs=pl.BlockSpec((1, C, tile_s), lambda b, s: (b, 0, s)),
        ),
        compiler_params=pltpu.CompilerParams(
            dimension_semantics=("parallel", "parallel")),
    )(tT, w1T, b1c, w2T, b2c, x3)

    return out.reshape(B, C, D, H, W)


# ------------------------------------------------------------------
# Pure-JAX reference for correctness checking
# ------------------------------------------------------------------
def reference(x, t, w1, b1, w2, b2):
    h = jnp.maximum(t @ w1 + b1, 0.0)
    mb = h @ w2 + b2
    C = x.shape[1]
    m = mb[:, :C].reshape(mb.shape[0], C, 1, 1, 1)
    b = mb[:, C:].reshape(mb.shape[0], C, 1, 1, 1)
    return m * x + b


if __name__ == "__main__":
    # Small shapes consistent with the module.
    B, C, D, H, W = 2, 4, 8, 16, 16
    time_dim = 32
    latent_dim = min(time_dim, C * 4)       # default latent_dim branch -> 16

    key = jax.random.PRNGKey(0)
    kx, kt, k1, k2, k3, k4 = jax.random.split(key, 6)

    x = jax.random.normal(kx, (B, C, D, H, W), dtype=jnp.float32)
    t = jax.random.normal(kt, (B, time_dim), dtype=jnp.float32)

    # Synthetic parameters; stored as (in, out) — transpose of torch's (out, in).
    w1 = jax.random.normal(k1, (time_dim, latent_dim), dtype=jnp.float32) * 0.1
    b1 = jax.random.normal(k2, (latent_dim,), dtype=jnp.float32) * 0.1
    w2 = jax.random.normal(k3, (latent_dim, 2 * C), dtype=jnp.float32) * 0.1
    b2 = jax.random.normal(k4, (2 * C,), dtype=jnp.float32) * 0.1

    out = add_time_to_image(x, t, w1, b1, w2, b2)
    out = jax.block_until_ready(out)

    ref = reference(x, t, w1, b1, w2, b2)
    assert out.shape == (B, C, D, H, W)
    assert jnp.allclose(out, ref, atol=1e-4, rtol=1e-4), "mismatch vs reference"

    print("KERNEL_OK")
</pallas_src>

<mosaic_0001>
module attributes {stable_mosaic.version = 11 : i64} {
  func.func @_film_time_kernel(%arg0: i32, %arg1: i32, %arg2: memref<32x2xf32, #tpu.memory_space<vmem>>, %arg3: memref<16x32xf32, #tpu.memory_space<vmem>>, %arg4: memref<16x1xf32, #tpu.memory_space<vmem>>, %arg5: memref<8x16xf32, #tpu.memory_space<vmem>>, %arg6: memref<8x1xf32, #tpu.memory_space<vmem>>, %arg7: memref<1x4x2048xf32, #tpu.memory_space<vmem>>, %arg8: memref<1x4x2048xf32, #tpu.memory_space<vmem>>) attributes {dimension_semantics = [#tpu.dimension_semantics<parallel>, #tpu.dimension_semantics<parallel>], iteration_bounds = array<i64: 2, 1>, scalar_prefetch = 0 : i64, scratch_operands = 0 : i64, tpu.core_type = #tpu.core_type<tc>, window_params = [{pipeline_mode = #tpu.pipeline_mode<synchronous>, transform_indices = @transform_0, window_bounds = array<i64: 32, 2>}, {pipeline_mode = #tpu.pipeline_mode<synchronous>, transform_indices = @transform_1, window_bounds = array<i64: 16, 32>}, {pipeline_mode = #tpu.pipeline_mode<synchronous>, transform_indices = @transform_2, window_bounds = array<i64: 16, 1>}, {pipeline_mode = #tpu.pipeline_mode<synchronous>, transform_indices = @transform_3, window_bounds = array<i64: 8, 16>}, {pipeline_mode = #tpu.pipeline_mode<synchronous>, transform_indices = @transform_4, window_bounds = array<i64: 8, 1>}, {transform_indices = @transform_5, window_bounds = array<i64: 1, 4, 2048>}, {transform_indices = @transform_6, window_bounds = array<i64: 1, 4, 2048>}]} {
    %0 = tpu.iota {dimensions = array<i32: 0>} : vector<2x1xi32>
    %1 = vector.broadcast %arg0 : i32 to vector<2x1xi32>
    %2 = arith.cmpi eq, %0, %1 : vector<2x1xi32>
    %c0 = arith.constant 0 : index
    %c0_0 = arith.constant 0 : index
    %3 = vector.load %arg2[%c0, %c0_0] : memref<32x2xf32, #tpu.memory_space<vmem>>, vector<32x2xf32>
    %4 = arith.extui %2 : vector<2x1xi1> to vector<2x1xi32>
    %5 = arith.sitofp %4 : vector<2x1xi32> to vector<2x1xf32>
    %cst = arith.constant dense<0.000000e+00> : vector<32x1xf32>
    %6 = tpu.matmul %3, %5, %cst {dimension_numbers = #tpu.dot_dimension_numbers<[1], [0], [0], [1], [0, 0, 1, 1], [], []>} : vector<32x2xf32>, vector<2x1xf32>, vector<32x1xf32> -> vector<32x1xf32>
    %c0_1 = arith.constant 0 : index
    %c0_2 = arith.constant 0 : index
    %7 = vector.load %arg3[%c0_1, %c0_2] : memref<16x32xf32, #tpu.memory_space<vmem>>, vector<16x32xf32>
    %cst_3 = arith.constant dense<0.000000e+00> : vector<16x1xf32>
    %8 = tpu.matmul %7, %6, %cst_3 {dimension_numbers = #tpu.dot_dimension_numbers<[1], [0], [0], [1], [0, 0, 1, 1], [], []>} : vector<16x32xf32>, vector<32x1xf32>, vector<16x1xf32> -> vector<16x1xf32>
    %c0_4 = arith.constant 0 : index
    %c0_5 = arith.constant 0 : index
    %9 = vector.load %arg4[%c0_4, %c0_5] : memref<16x1xf32, #tpu.memory_space<vmem>>, vector<16x1xf32>
    %10 = arith.addf %8, %9 : vector<16x1xf32>
    %cst_6 = arith.constant 0.000000e+00 : f32
    %11 = vector.broadcast %cst_6 : f32 to vector<16x1xf32>
    %12 = arith.maximumf %10, %11 : vector<16x1xf32>
    %c0_7 = arith.constant 0 : index
    %c0_8 = arith.constant 0 : index
    %13 = vector.load %arg5[%c0_7, %c0_8] : memref<8x16xf32, #tpu.memory_space<vmem>>, vector<8x16xf32>
    %cst_9 = arith.constant dense<0.000000e+00> : vector<8x1xf32>
    %14 = tpu.matmul %13, %12, %cst_9 {dimension_numbers = #tpu.dot_dimension_numbers<[1], [0], [0], [1], [0, 0, 1, 1], [], []>} : vector<8x16xf32>, vector<16x1xf32>, vector<8x1xf32> -> vector<8x1xf32>
    %c0_10 = arith.constant 0 : index
    %c0_11 = arith.constant 0 : index
    %15 = vector.load %arg6[%c0_10, %c0_11] : memref<8x1xf32, #tpu.memory_space<vmem>>, vector<8x1xf32>
    %16 = arith.addf %14, %15 : vector<8x1xf32>
    %17 = vector.extract_strided_slice %16 {offsets = [0, 0], sizes = [4, 1], strides = [1, 1]} : vector<8x1xf32> to vector<4x1xf32>
    %18 = vector.extract_strided_slice %16 {offsets = [4, 0], sizes = [4, 1], strides = [1, 1]} : vector<8x1xf32> to vector<4x1xf32>
    %c0_12 = arith.constant 0 : index
    %c0_13 = arith.constant 0 : index
    %c0_14 = arith.constant 0 : index
    %19 = vector.load %arg7[%c0_12, %c0_13, %c0_14] : memref<1x4x2048xf32, #tpu.memory_space<vmem>>, vector<1x4x2048xf32>
    %20 = vector.shape_cast %17 : vector<4x1xf32> to vector<1x4x1xf32>
    %21 = vector.broadcast %20 : vector<1x4x1xf32> to vector<1x4x2048xf32>
    %22 = arith.mulf %21, %19 : vector<1x4x2048xf32>
    %23 = vector.shape_cast %18 : vector<4x1xf32> to vector<1x4x1xf32>
    %24 = vector.broadcast %23 : vector<1x4x1xf32> to vector<1x4x2048xf32>
    %25 = arith.addf %22, %24 : vector<1x4x2048xf32>
    %c0_15 = arith.constant 0 : index
    %c0_16 = arith.constant 0 : index
    %c0_17 = arith.constant 0 : index
    %26 = vector.load %arg8[%c0_15, %c0_16, %c0_17] : memref<1x4x2048xf32, #tpu.memory_space<vmem>>, vector<1x4x2048xf32>
    tpu.vector_store %arg8[%c0_15, %c0_16, %c0_17], %25 {strides = array<i32>} : memref<1x4x2048xf32, #tpu.memory_space<vmem>>, vector<1x4x2048xf32>,
    return
  }
  func.func @transform_0(%arg0: i32, %arg1: i32) -> (i32, i32) {
    %c0_i32 = arith.constant 0 : i32
    %c0_i32_0 = arith.constant 0 : i32
    %c0_i32_1 = arith.constant 0 : i32
    return %c0_i32, %c0_i32_0 : i32, i32
  }
  func.func @transform_1(%arg0: i32, %arg1: i32) -> (i32, i32) {
    %c0_i32 = arith.constant 0 : i32
    %c0_i32_0 = arith.constant 0 : i32
    %c0_i32_1 = arith.constant 0 : i32
    return %c0_i32, %c0_i32_0 : i32, i32
  }
  func.func @transform_2(%arg0: i32, %arg1: i32) -> (i32, i32) {
    %c0_i32 = arith.constant 0 : i32
    %c0_i32_0 = arith.constant 0 : i32
    %c0_i32_1 = arith.constant 0 : i32
    return %c0_i32, %c0_i32_0 : i32, i32
  }
  func.func @transform_3(%arg0: i32, %arg1: i32) -> (i32, i32) {
    %c0_i32 = arith.constant 0 : i32
    %c0_i32_0 = arith.constant 0 : i32
    %c0_i32_1 = arith.constant 0 : i32
    return %c0_i32, %c0_i32_0 : i32, i32
  }
  func.func @transform_4(%arg0: i32, %arg1: i32) -> (i32, i32) {
    %c0_i32 = arith.constant 0 : i32
    %c0_i32_0 = arith.constant 0 : i32
    %c0_i32_1 = arith.constant 0 : i32
    return %c0_i32, %c0_i32_0 : i32, i32
  }
  func.func @transform_5(%arg0: i32, %arg1: i32) -> (i32, i32, i32) {
    %c0_i32 = arith.constant 0 : i32
    %c0_i32_0 = arith.constant 0 : i32
    return %arg0, %c0_i32, %arg1 : i32, i32, i32
  }
  func.func @transform_6(%arg0: i32, %arg1: i32) -> (i32, i32, i32) {
    %c0_i32 = arith.constant 0 : i32
    %c0_i32_0 = arith.constant 0 : i32
    return %arg0, %c0_i32, %arg1 : i32, i32, i32
  }
}

</mosaic_0001>

<bundles_post_ra>
// kernel: tpu_custom_call.1
= control target key start
LH: loop header
LB: loop body
LE: loop exit
PB: predicated region body
PF: predicated region fallthrough
CT: control target
= control target key end

     0   :  { %11 = vsyncpa [#allocation3], 0  ;;  %s1257_s0 = inlined_call_operand.vmem [shape: f32[32,2], index: 0, kind: input, shape index: {}]   ;;  %s1258_s1 = inlined_call_operand.vmem [shape: f32[16,32], index: 1, kind: input, shape index: {}]   ;;  %s1259_s2 = inlined_call_operand.vmem [shape: f32[16,1], index: 2, kind: input, shape index: {}]   ;;  %s1260_s3 = inlined_call_operand.vmem [shape: f32[8,16], index: 3, kind: input, shape index: {}]   ;;  %s1261_s4 = inlined_call_operand.vmem [shape: f32[8,1], index: 4, kind: input, shape index: {}]   ;;  %s1262_s5 = inlined_call_operand.hbm [shape: f32[2,4,2048], index: 5, kind: input, shape index: {}]   ;;  %s1263_s6 = inlined_call_operand.hbm [shape: f32[2,4,2048], index: 6, kind: output, shape index: {}]  }
   0x1   :  { %13 = vsyncpa [#allocation3 + $0x1], 0 }
   0x2   :  { %14 = vsyncpa [#allocation4], 0 }
   0x3   :  { %16 = vsyncpa [#allocation4 + $0x1], 0  ;;  %s1066_s21 = smov 0   ;;  %s1068_s22 = smov 0  }
   0x4   :  { %s1070_s23 = smov 0   ;;  %s1072_s24 = smov 0  }
   0x5   :  { %s1074_s25 = smov 0   ;;  %s1076_s26 = smov 0  }
   0x6 LB: > { %s776_s27 = sadd.s32 4294967295, %s1024_s26   ;;  %s777_s28 = sadd.s32 4294967294, %s1024_s26   ;;  %s1024_s26 = sphi %s1076_s26, %s22_s26   ;;  %s1020_s25 = sphi %s1074_s25, %s1275_s25   ;;  %s1016_s24 = sphi %s1072_s24, %s1274_s24   ;;  %s1012_s23 = sphi %s1070_s23, %s1273_s23   ;;  %s1008_s22 = sphi %s1068_s22, %s1272_s22   ;;  %s1004_s21 = sphi %s1066_s21, %s1271_s21  }
   0x7   : > { %s34_s29 = sadd.s32 1, %s1020_s25  ;;  %s148_s30 = sadd.s32 1, %s1012_s23 }
   0x8   : > { %p36_p0 = scmp.ge.s32.totalorder %s34_s29, 2  ;;  %p155_p1 = scmp.ne.s32.totalorder %s1012_s23, %s1008_s22 }
   0x9   : > { %p156_p2 = scmp.eq.s32.totalorder %s1024_s26, 0  ;;  %p161_p3 = scmp.ne.s32.totalorder %s1008_s22, %s1004_s21 }
   0xa   : > { %s1277_s29 = smov (%p36_p0, %s34_s29), 0  ;;  %p162_p5 = scmp.eq.s32.totalorder %s776_s27, 0 }
   0xb   : > { %p1107_p4 = por %p156_p2, %p155_p1  ;;  %s143_s8 = ssub.s32 %s1020_s25, %s1277_s29 }
   0xc   : > { %p187_p6 = scmp.eq.s32.totalorder %s776_s27, 1  ;;  %p146_p7 = scmp.eq.s32.totalorder %s143_s8, 0 }
   0xd   : > { %p1113_p8 = por %p162_p5, %p161_p3  ;;  %p193_p10 = scmp.eq.s32.totalorder %s777_s28, 1 }
   0xe   : > { %p1117_p9 = por %p187_p6, %p155_p1  ;;  %p854_p13 = scmp.lt.s32.totalorder %s1024_s26, 2 }
   0xf   : > { %s1122_s11 = scalar_select %p146_p7, %s1012_s23, %s148_s30  }
  0x10   : > { %p1124_p11 = por %p193_p10, %p161_p3  ;;  %s228_s13 = sand.u32 1, %s1012_s23  }
  0x11   : > { %s780_s14 = sshll.u32 %s228_s13, 6  ;;  %s800_s15 = sshll.u32 %s1020_s25, 10 }
  0x12   : > { %s1267_s12 = scalar_select %p1124_p11, 1, 0 }
  0x13   : > { %s240_s18 = scalar_lea.hbm %s1262_s5, %s800_s15  ;;  %s232_s19 = scalar_lea.vmem [#allocation2], %s780_s14 }
  0x14   : > { %s242_s20 = sshll.u32 %s232_s19, 4  ;;  %p1137_p0 = pnand %p854_p13, %p1107_p4  ;;  %s243_s20 = int_to_ptr.vmem [resolvable:$true] %s242_s20 }
  0x15   : > { %p783_p1 = scmp.ge.s32.totalorder %s1024_s26, 1  ;;  %p247_p2 = scmp.lt.s32.totalorder %s1024_s26, 3 }
  0x16   : > { %s229_s28 = scalar_lea.sflag [#allocation3], %s228_s13  ;;  %p918_p3 = pneg %p1137_p0 }
  0x17   : > { %s929_s30 = scalar_lea.vmem %s243_s20, 1024  ;;  %s1026_s8 = smov [#allocation2]  }
  0x18   : > { %p930_p5 = scmp.ne.s32.totalorder %s243_s20, %s929_s30  ;;  %s934_s15 = sshll.u32 %s1026_s8, 4  ;;  %s935_s15 = int_to_ptr.vmem [resolvable:$false] %s934_s15 }
  0x19   : > { %s936_s14 = scalar_lea.vmem %s935_s15, 2048  ;;  %p937_p10 = scmp.lt.s32.totalorder %s243_s20, %s935_s15 }
  0x1a   : > { %p932_p6 = pnand %p930_p5, %p918_p3  ;;  %p938_p12 = scmp.lt.s32.totalorder %s936_s14, %s929_s30 }
  0x1c   : > { %p933_p7 = pneg %p932_p6  ;;  %p939_p4 = por %p938_p12, %p937_p10 }
  0x1e   : > { %p940_p13 = pnand %p939_p4, %p933_p7 }
  0x20   : > { %943 = shalt.err (!%p940_p13)
}
  0x21   : > { %849 = dma.hbm_to_vmem [thread:$0]  (!%p1137_p0), %s240_s18, 1024, %s243_s20, %s229_s28  }
  0x22   : > { %p248_p11 = pnand %p783_p1, %p247_p2 }
  0x23   : > { %s1152_s7 = sand.u32 (!%p248_p11), 1, %s1008_s22  }
  0x24   : > { %251 = sbr.rel (%p248_p11) target bundleno = 800 (0x320), region = 44  ;;  %s784_s13 = sshll.u32 (!%p248_p11), %s1152_s7, 6 }
  0x25   : > { %s254_s16 = scalar_lea.sflag (!%p248_p11), [#allocation3], %s1152_s7  ;;  %s1158_s17 = scalar_lea.vmem (!%p248_p11), [#allocation2], %s784_s13 }
  0x29   : > { %995 = dma.done.wait (%p1113_p8), %s254_s16, 1024  }
  0x2a   : > { %997 = vsyncadd (%p1113_p8), %s254_s16, 4294966272  ;;  %v288_v0 = vlaneseq  ;;  %v290_v1 = vstv %s1016_s24  ;;  %vm311_vm0 = vcmask 1041408   ;;  %v1027_v3 = vmov 0.0   ;;  %v292_v5 = vld [vmem:[%s1257_s0] sm:$0xff]  ;;  %v293_v6 = vld [vmem:[%s1257_s0 + $0x8] sm:$0xff]  ;;  %s285_s14 = scalar_lea.vmem [#allocation5], %s784_s13 }
  0x2b   : > { %vm298_vm2 = vcmask 15360   ;;  %v294_v7 = vld [vmem:[%s1257_s0 + $0x10] sm:$0xff]  ;;  %v295_v8 = vld [vmem:[%s1257_s0 + $0x18] sm:$0xff]  ;;  %v400_v9 = vld [vmem:[%s1258_s1] sm:$0xff]  ;;  %vm404_vm3 = vcmask 261120   ;;  %vm1028_vm4 = vmmov 0  }
  0x2c   : > { %v289_v2 = vshrl.u32 %v288_v0, 7  ;;  %818 = vmatprep.mubr.msk.f32.mxu0 %vm298_vm2, %v292_v5  ;;  %832 = vmatprep.mubr.msk.f32.mxu1 %vm404_vm3, %v400_v9  ;;  %v401_v14 = vld [vmem:[%s1258_s1 + $0x8] sm:$0xff]  ;;  %v402_v17 = vld [vmem:[%s1259_s2] sm:$0xff]  ;;  %vm490_vm5 = vcmask 130048   ;;  %v1029_v24 = vmov 0   ;;  %v566_v31 = vld [vmem:[%s1158_s17 + $0x10] sm:$0xff] }
  0x2d   : > { %v403_v15 = vld [vmem:[%s1259_s2 + $0x8] sm:$0xff]  ;;  %v488_v23 = vld [vmem:[%s1260_s3] sm:$0xff]  ;;  %907 = vset.pattern.permute.xlu0 %v1029_v24  ;;  %v567_v32 = vld [vmem:[%s1158_s17 + $0x18] sm:$0xff]  ;;  %v587_v39 = vcombine.high %v566_v31, %v566_v31  ;;  %s692_s16 = sshll.u32 %s285_s14, 4  ;;  %s676_s13 = scalar_lea.sflag [#allocation4], %s1152_s7  ;;  %s1211_s16 = int_to_ptr.vmem [resolvable:$true] %s692_s16 }
  0x2e   : > { %vm291_vm1 = vcmp.eq.s32.totalorder %v289_v2, %v290_v1  ;;  %v489_v25 = vld [vmem:[%s1261_s4] sm:$0xff]  ;;  %v565_v30 = vld [vmem:[%s1158_s17 + $0x8] sm:$0xff]  ;;  %v570_v35 = vld [vmem:[%s1158_s17 + $0x30] sm:$0xff]  ;;  %v588_v40 = vcombine.high %v567_v32, %v567_v32  ;;  %s944_s20 = scalar_lea.vmem %s1211_s16, 1024  ;;  %s1030_s27 = smov [#allocation5]  }
  0x2f   : > { %v786_v4 = vsel %vm291_vm1, 1.0, %v1027_v3  ;;  %v564_v29 = vld [vmem:[%s1158_s17] sm:$0xff]  ;;  %v569_v34 = vld [vmem:[%s1158_s17 + $0x28] sm:$0xff]  ;;  %v571_v36 = vld [vmem:[%s1158_s17 + $0x38] sm:$0xff]  ;;  %v586_v38 = vcombine.high %v565_v30, %v565_v30  ;;  %v591_v44 = vcombine.high %v570_v35, %v570_v35  ;;  %p945_p8 = scmp.ne.s32.totalorder %s1211_s16, %s944_s20  ;;  %s948_s9 = sshll.u32 %s1030_s27, 4  ;;  %s949_s9 = int_to_ptr.vmem [resolvable:$false] %s948_s9 }
  0x30   : > { %816 = vmatprep.subr.msk.mxu0 %vm311_vm0, %v786_v4  ;;  %v568_v33 = vld [vmem:[%s1158_s17 + $0x20] sm:$0xff]  ;;  %v585_v37 = vcombine.high %v564_v29, %v564_v29  ;;  %v590_v43 = vcombine.high %v569_v34, %v569_v34  ;;  %v592_v45 = vcombine.high %v571_v36, %v571_v36  ;;  %s801_s17 = sshll.u32 %s1016_s24, 10  ;;  %s950_s28 = scalar_lea.vmem %s949_s9, 2048 }
  0x31   : > { %817 = vmatpush3.msk.msra.mxu0 %vm311_vm0, %v786_v4  ;;  %v589_v41 = vcombine.high %v568_v33, %v568_v33  ;;  %s1209_s24 = scalar_lea.hbm %s1263_s6, %s801_s17  ;;  %p946_p11 = pnand %p945_p8, %p1117_p9 }
  0x32   : > { %835 = vmatprep.subr.mxu0 %v1027_v3  ;;  %819 = vmatmul.mubr.msk.f32.vlgmr.msra.gmra.mxu0 %vm298_vm2, %v293_v6  ;;  %p951_p0 = scmp.lt.s32.totalorder %s1211_s16, %s949_s9  ;;  %p952_p1 = scmp.lt.s32.totalorder %s950_s28, %s944_s20 }
  0x33   : > { %821 = vmatprep.mubr.msk.f32.mxu0 %vm298_vm2, %v294_v7  ;;  %p947_p12 = pneg %p946_p11 }
  0x34   : > { %p953_p2 = por %p952_p1, %p951_p0 }
  0x36   : > { %822 = vmatmul.mubr.msk.f32.gmra.mxu0 %vm298_vm2, %v295_v8  ;;  %p954_p3 = pnand %p953_p2, %p947_p12 }
  0x37   : > { %839 = vmatprep.mubr.msk.f32.mxu0 %vm1028_vm4, %v1027_v3 }
  0xf2   : > { %v820_v10 = vpop.f32.mrf.mxu0 }
  0xf4   : > { %v381_v11 = vpop.f32.mrf.mxu0 }
  0xf6   : > { %v823_v12 = vpop.f32.mrf.mxu0 }
  0xf7   : > { %824 = vmatprep.subr.mxu1 %v823_v12 }
  0xf8   : > { %v391_v13 = vpop.f32.mrf.mxu0  ;;  %825 = vmatpush3.msra.mxu1 %v823_v12 }
  0xf9   : > { %826 = vmatprep.subr.mxu1 %v391_v13 }
  0xfa   : > { %827 = vmatpush3.msra.mxu1 %v391_v13 }
  0xfb   : > { %828 = vmatprep.subr.mxu1 %v820_v10 }
  0xfc   : > { %829 = vmatpush3.msra.mxu1 %v820_v10 }
  0xfd   : > { %830 = vmatprep.subr.mxu1 %v381_v11 }
  0xfe   : > { %831 = vmatpush3.msra.mxu1 %v381_v11 }
  0xff   : > { %833 = vmatmul.mubr.msk.f32.vlgmr.msra.gmra.mxu1 %vm404_vm3, %v401_v14 }
 0x1bf   : > { %v834_v16 = vpop.f32.mrf.mxu1 }
 0x1c0   : > { %v483_v18 = vadd.f32 %v834_v16, %v403_v15 }
 0x1c1   : > { %v477_v19 = vpop.f32.mrf.mxu1 }
 0x1c2   : > { %v487_v20 = vmax.f32 %v483_v18, 0.0  ;;  %v478_v21 = vadd.f32 %v477_v19, %v402_v17 }
 0x1c4   : > { %v486_v22 = vmax.f32 %v478_v21, 0.0  ;;  %836 = vmatpush3.msra.mxu0 %v487_v20 }
 0x1c5   : > { %837 = vmatprep.subr.mxu0 %v1027_v3 }
 0x1c6   : > { %838 = vmatpush3.msra.mxu0 %v486_v22 }
 0x1c7   : > { %840 = vmatmul.mubr.msk.f32.vlgmr.msra.gmra.mxu0 %vm490_vm5, %v488_v23 }
 0x287   : > { %v560_v26 = vpop.f32.mrf.mxu0 }
 0x288   : > { %v561_v27 = vadd.f32 %v560_v26, %v489_v25 }
 0x289   : > { %v841_v28 = vpop.f32.mrf.mxu0 }
 0x28a   : > { %574 = vperm.xlu0 %907, %v561_v27  }
 0x305   : > { %v575_v42 = vpop.permute.xlu0 %574 }
 0x306   : > { %v617_v46 = vrot.slane %v575_v42, 4  ;;  %v601_v47 = vmul.f32 %v575_v42, %v564_v29  ;;  %v602_v48 = vmul.f32 %v585_v37, %v575_v42  ;;  %v603_v49 = vmul.f32 %v575_v42, %v565_v30 }
 0x307   : > { %v604_v50 = vmul.f32 %v586_v38, %v575_v42  ;;  %v605_v51 = vmul.f32 %v575_v42, %v566_v31  ;;  %v606_v52 = vmul.f32 %v587_v39, %v575_v42  ;;  %v607_v53 = vmul.f32 %v575_v42, %v567_v32 }
 0x308   : > { %v608_v54 = vmul.f32 %v588_v40, %v575_v42  ;;  %v609_v55 = vmul.f32 %v575_v42, %v568_v33  ;;  %v610_v56 = vmul.f32 %v589_v41, %v575_v42  ;;  %v611_v57 = vmul.f32 %v575_v42, %v569_v34 }
 0x309   : > { %v612_v58 = vmul.f32 %v590_v43, %v575_v42  ;;  %v613_v59 = vmul.f32 %v575_v42, %v570_v35  ;;  %v614_v60 = vmul.f32 %v591_v44, %v575_v42  ;;  %v615_v61 = vmul.f32 %v575_v42, %v571_v36 }
 0x30a   : > { %v616_v62 = vmul.f32 %v592_v45, %v575_v42  ;;  %v619_v63 = vadd.f32 %v617_v46, %v601_v47  ;;  %v620_v0 = vadd.f32 %v617_v46, %v602_v48  ;;  %v621_v1 = vadd.f32 %v617_v46, %v603_v49 }
 0x30b   : > { %v622_v2 = vadd.f32 %v617_v46, %v604_v50  ;;  %v623_v3 = vadd.f32 %v617_v46, %v605_v51  ;;  %v624_v4 = vadd.f32 %v617_v46, %v606_v52  ;;  %v625_v5 = vadd.f32 %v617_v46, %v607_v53 }
 0x30c   : > { %v626_v6 = vadd.f32 %v617_v46, %v608_v54  ;;  %v627_v7 = vadd.f32 %v617_v46, %v609_v55  ;;  %v628_v8 = vadd.f32 %v617_v46, %v610_v56  ;;  %v629_v9 = vadd.f32 %v617_v46, %v611_v57 }
 0x30d   : > { %v630_v10 = vadd.f32 %v617_v46, %v612_v58  ;;  %v631_v11 = vadd.f32 %v617_v46, %v613_v59  ;;  %v632_v12 = vadd.f32 %v617_v46, %v614_v60  ;;  %v633_v13 = vadd.f32 %v617_v46, %v615_v61 }
 0x30e   : > { %v634_v14 = vadd.f32 %v617_v46, %v616_v62  ;;  %v651_v15 = vcombine.low %v619_v63, %v620_v0  ;;  %v652_v16 = vcombine.low %v621_v1, %v622_v2  ;;  %v653_v17 = vcombine.low %v623_v3, %v624_v4 }
 0x30f   : > { %v654_v18 = vcombine.low %v625_v5, %v626_v6  ;;  %v655_v19 = vcombine.low %v627_v7, %v628_v8  ;;  %v656_v20 = vcombine.low %v629_v9, %v630_v10  ;;  %v657_v21 = vcombine.low %v631_v11, %v632_v12 }
 0x310   : > { %v658_v22 = vcombine.low %v633_v13, %v634_v14  ;;  %667 = vst [vmem:[%s285_s14] sm:$0xff] %v651_v15  ;;  %668 = vst [vmem:[%s285_s14 + $0x8] sm:$0xff] %v652_v16 }
 0x311   : > { %669 = vst [vmem:[%s285_s14 + $0x10] sm:$0xff] %v653_v17  ;;  %670 = vst [vmem:[%s285_s14 + $0x18] sm:$0xff] %v654_v18 }
 0x312   : > { %671 = vst [vmem:[%s285_s14 + $0x20] sm:$0xff] %v655_v19  ;;  %672 = vst [vmem:[%s285_s14 + $0x28] sm:$0xff] %v656_v20 }
 0x313   : > { %673 = vst [vmem:[%s285_s14 + $0x30] sm:$0xff] %v657_v21  ;;  %674 = vst [vmem:[%s285_s14 + $0x38] sm:$0xff] %v658_v22 }
 0x314   : > { %957 = shalt.err (!%p954_p3)
}
 0x315   : > { %s958_s30 = scalar_lea.hbm %s1209_s24, 1024  ;;  %s962_s15 = scalar_lea.hbm %s1263_s6, 2048 }
 0x316   : > { %p959_p5 = scmp.ne.s32.totalorder %s1209_s24, %s958_s30  ;;  %p963_p10 = scmp.lt.s32.totalorder %s1209_s24, %s1263_s6 }
 0x317   : > { %p964_p4 = scmp.lt.s32.totalorder %s962_s15, %s958_s30 }
 0x318   : > { %p960_p6 = pnand %p959_p5, %p1117_p9 }
 0x319   : > { %p965_p13 = por %p964_p4, %p963_p10 }
 0x31a   : > { %p961_p7 = pneg %p960_p6 }
 0x31c   : > { %p966_p8 = pnand %p965_p13, %p961_p7 }
 0x31e   : > { %969 = shalt.err (!%p966_p8)
}
 0x31f   : > { %844 = dma.vmem_to_hbm [thread:$0]  (%p1117_p9), %s1211_s16, 1024, %s1209_s24, %s676_s13  }
 0x320 PF: > { %s704_s18 = sand.u32 1, %s1004_s21   ;;  %p1269_p11 = scmp.ne.s32.totalorder %s1267_s12, 0 }
 0x321   : > { %p1270_p12 = scmp.ge.s32.totalorder %s1024_s26, 2  ;;  %s705_s19 = scalar_lea.sflag [#allocation4], %s704_s18 }
 0x323   : > { %p851_p0 = pnand %p1270_p12, %p1269_p11 }
 0x325   : > { %p852_p1 = pneg %p851_p0 }
 0x327   : > { %999 = dma.done.wait (%p852_p1), %s705_s19, 1024  }
 0x328   : > { %1001 = vsyncadd (%p852_p1), %s705_s19, 4294966272  ;;  %s22_s26 = sadd.s32 1, %s1024_s26   ;;  %s1271_s21 = smov %s1008_s22 }
 0x329   : > { %p19_p2 = scmp.ge.s32.totalorder %s22_s26, 4   ;;  %s1272_s22 = smov %s1012_s23 }
 0x32a   : > { %s1273_s23 = smov %s1122_s11  ;;  %s1274_s24 = smov %s1020_s25 }
 0x32b   : > { %s1275_s25 = smov %s1277_s29  ;;  %21 = sbr.rel (!%p19_p2) target bundleno = 6 (0x6), region = 89 }
 0x330   :  { %710 = vsyncpa [#allocation3], 1 }
 0x331   :  { %712 = vsyncpa [#allocation3 + $0x1], 1 }
 0x332   :  { %713 = vsyncpa [#allocation4], 1 }
 0x333   :  { %715 = vsyncpa [#allocation4 + $0x1], 1 }

</bundles_post_ra>
